<compile_context>
chip_gen: v7x
topology: tpu7x:2x2x1
jax: 0.10.0
libtpu: 0.0.40
codegen_flags: <defaults>
</compile_context>

<pallas_src>
import functools

import jax
import jax.numpy as jnp
from jax import lax
from jax.experimental import pallas as pl
from jax.experimental.pallas import tpu as pltpu

LANE = 128
_MAX_TM_F32 = 2048              # 2048*128*4B = 1 MiB per f32 input tile
_MAX_TM_16B = 4096              # bf16/fp16: also 1 MiB per input tile
_TARGET_BLOCKS = 8              # keep >= ~8 grid steps for v7x dual-TC split
_MIN_PALLAS_ELEMENTS = 1 << 16  # below this, XLA's fused elementwise wins
_VMEM_LIMIT_BYTES = 32 * 1024 * 1024


def _cdiv(a, b):
    return (a + b - 1) // b


def _round_up(a, b):
    return _cdiv(a, b) * b


def _bce_blur_kernel(pred_ref, true_ref, out_ref, *, inv_alpha, tm,
                     mask_mode, n_valid, valid_rows):
    x = pred_ref[...].astype(jnp.float32)
    y = true_ref[...].astype(jnp.float32)

    # Numerically stable BCEWithLogits (reduction='none'):
    #   bce = max(x, 0) - x*y + log(1 + exp(-|x|))
    # t = 1 + e is shared between the log and the sigmoid. The sigmoid uses
    # an approx EUP reciprocal plus one Newton step (2 cheap VPU ops) so the
    # ~20x exponent amplification in alpha_factor stays within tolerance.
    e = jnp.exp(-jnp.abs(x))
    t = 1.0 + e
    bce = jnp.maximum(x, 0.0) - x * y + jnp.log(t)
    inv = pl.reciprocal(t, approx=True)
    inv = inv * (2.0 - t * inv)                      # Newton refinement
    p = jnp.where(x >= 0.0, inv, e * inv)            # sigmoid(x)

    dx = p - y
    alpha_factor = 1.0 - jnp.exp((dx - 1.0) * inv_alpha)
    loss = bce * alpha_factor

    # Zero ragged-boundary garbage / wrapper padding (trace-time branch; the
    # select also stops NaN/Inf from undefined boundary data propagating).
    if mask_mode == "row":
        row = lax.broadcasted_iota(jnp.int32, (tm, LANE), 0)
        loss = jnp.where(pl.program_id(0) * tm + row < valid_rows, loss, 0.0)
    elif mask_mode == "flat":
        row = lax.broadcasted_iota(jnp.int32, (tm, LANE), 0)
        lane = lax.broadcasted_iota(jnp.int32, (tm, LANE), 1)
        idx = (pl.program_id(0) * tm + row) * LANE + lane
        loss = jnp.where(idx < n_valid, loss, 0.0)

    # Lane-dense per-block partial sums: tm/8 VPU adds per output vreg; the
    # single cross-lane reduction to a scalar happens in the wrapper (XLA).
    out_ref[0] = jnp.sum(loss.reshape(tm // 8, 8, LANE), axis=0)


def bce_blur_with_logits_loss(pred, true, alpha=0.05,
                              min_pallas_elements=_MIN_PALLAS_ELEMENTS):
    """Mean of BCE-with-logits * blur alpha-factor (matches the PyTorch module)."""
    assert pred.shape == true.shape
    n = int(pred.size)
    assert n < 2 ** 31, "int32 flat-index mask would overflow"

    if n < min_pallas_elements:
        # Launch/padding overhead dwarfs the work; let XLA fuse it.
        return _reference(pred, true, alpha).astype(jnp.float32)

    if n % LANE == 0:
        # Common NCHW case: no wrapper-side copy at all.
        rows = n // LANE
        pred2 = pred.reshape(rows, LANE)
        true2 = true.reshape(rows, LANE)
        flat_mask_needed = False
    else:
        # Pad only to a 16*LANE multiple (tiny), NOT to tm*LANE.
        rows = _round_up(_cdiv(n, LANE), 16)
        pad = rows * LANE - n
        pred2 = jnp.pad(pred.reshape(-1), (0, pad)).reshape(rows, LANE)
        true2 = jnp.pad(true.reshape(-1), (0, pad)).reshape(rows, LANE)
        flat_mask_needed = True

    # Big lane-dense tiles, but keep >= ~_TARGET_BLOCKS grid steps (v7x).
    max_tm = _MAX_TM_16B if jnp.dtype(pred.dtype).itemsize <= 2 else _MAX_TM_F32
    tm = max(16, min(max_tm, _round_up(_cdiv(rows, _TARGET_BLOCKS), 16)))
    grid0 = _cdiv(rows, tm)

    if flat_mask_needed:
        mask_mode = "flat"
    elif grid0 * tm == rows:
        mask_mode = "none"
    else:
        mask_mode = "row"          # only ragged boundary rows need masking

    kernel = functools.partial(
        _bce_blur_kernel,
        inv_alpha=float(1.0 / (float(alpha) + 0.0001)),   # trace-time fold
        tm=tm,
        mask_mode=mask_mode,
        n_valid=n,
        valid_rows=rows,
    )

    n_elems = grid0 * tm * LANE
    itemsize = jnp.dtype(pred.dtype).itemsize
    cost = pl.CostEstimate(
        flops=16 * n_elems,
        transcendentals=4 * n_elems,
        bytes_accessed=2 * rows * LANE * itemsize + grid0 * 8 * LANE * 4,
    )

    partials = pl.pallas_call(
        kernel,
        out_shape=jax.ShapeDtypeStruct((grid0, 8, LANE), jnp.float32),
        grid_spec=pltpu.PrefetchScalarGridSpec(
            num_scalar_prefetch=0,
            grid=(grid0,),
            in_specs=[
                pl.BlockSpec((tm, LANE), lambda i: (i, 0)),
                pl.BlockSpec((tm, LANE), lambda i: (i, 0)),
            ],
            out_specs=pl.BlockSpec((1, 8, LANE), lambda i: (i, 0, 0)),
        ),
        compiler_params=pltpu.CompilerParams(
            dimension_semantics=("parallel",),
            vmem_limit_bytes=_VMEM_LIMIT_BYTES,
        ),
        cost_estimate=cost,
    )(pred2, true2)

    return (jnp.sum(partials) / jnp.float32(n)).astype(jnp.float32)


def _reference(pred, true, alpha=0.05):
    x = pred.astype(jnp.float32)
    y = true.astype(jnp.float32)
    loss = jnp.maximum(x, 0.0) - x * y + jnp.log1p(jnp.exp(-jnp.abs(x)))
    p = jax.nn.sigmoid(x)
    dx = p - y
    alpha_factor = 1.0 - jnp.exp((dx - 1.0) / (alpha + 0.0001))
    return jnp.mean(loss * alpha_factor)


if __name__ == "__main__":
    key = jax.random.PRNGKey(0)
    k1, k2, k3, k4, k5, k6 = jax.random.split(key, 6)

    # 1) Small NCHW demo shape, forced through the Pallas path (single block,
    #    no masking, no wrapper pad).
    pred_s = jax.random.normal(k1, (2, 4, 16, 16), dtype=jnp.float32)
    true_s = (jax.random.uniform(k2, (2, 4, 16, 16)) > 0.7).astype(jnp.float32)
    out_s = bce_blur_with_logits_loss(pred_s, true_s, alpha=0.05,
                                      min_pallas_elements=0)
    out_s = jax.block_until_ready(out_s)
    ref_s = _reference(pred_s, true_s, alpha=0.05)
    assert jnp.allclose(out_s, ref_s, rtol=1e-5, atol=1e-6), (out_s, ref_s)

    # 2) Larger NCHW shape in bf16: multi-block grid, ragged last block,
    #    row-only mask, no wrapper pad (n % 128 == 0).
    pred_l = jax.random.normal(k3, (2, 3, 160, 160),
                               dtype=jnp.float32).astype(jnp.bfloat16)
    true_l = (jax.random.uniform(k4, (2, 3, 160, 160)) > 0.7).astype(jnp.bfloat16)
    out_l = bce_blur_with_logits_loss(pred_l, true_l, alpha=0.05)
    out_l = jax.block_until_ready(out_l)
    ref_l = _reference(pred_l, true_l, alpha=0.05)
    assert jnp.allclose(out_l, ref_l, rtol=2e-5, atol=1e-6), (out_l, ref_l)

    # 3) Non-128-multiple element count: exercises the tiny wrapper pad and
    #    the flat-index mask path, forced through Pallas.
    pred_r = jax.random.normal(k5, (3, 5, 33, 33), dtype=jnp.float32)
    true_r = (jax.random.uniform(k6, (3, 5, 33, 33)) > 0.7).astype(jnp.float32)
    out_r = bce_blur_with_logits_loss(pred_r, true_r, alpha=0.05,
                                      min_pallas_elements=0)
    out_r = jax.block_until_ready(out_r)
    ref_r = _reference(pred_r, true_r, alpha=0.05)
    assert jnp.allclose(out_r, ref_r, rtol=1e-5, atol=1e-6), (out_r, ref_r)

    print("KERNEL_OK")
</pallas_src>

<mosaic_0001>
module attributes {stable_mosaic.version = 11 : i64} {
  func.func @_bce_blur_kernel(%arg0: i32, %arg1: memref<16x128xf32, #tpu.memory_space<vmem>>, %arg2: memref<16x128xf32, #tpu.memory_space<vmem>>, %arg3: memref<1x8x128xf32, #tpu.memory_space<vmem>>) attributes {dimension_semantics = [#tpu.dimension_semantics<parallel>], iteration_bounds = array<i64: 1>, scalar_prefetch = 0 : i64, scratch_operands = 0 : i64, tpu.core_type = #tpu.core_type<tc>, window_params = [{transform_indices = @transform_0, window_bounds = array<i64: 16, 128>}, {transform_indices = @transform_1, window_bounds = array<i64: 16, 128>}, {transform_indices = @transform_2, window_bounds = array<i64: 1, 8, 128>}]} {
    %c0 = arith.constant 0 : index
    %c0_0 = arith.constant 0 : index
    %0 = vector.load %arg1[%c0, %c0_0] : memref<16x128xf32, #tpu.memory_space<vmem>>, vector<16x128xf32>
    %c0_1 = arith.constant 0 : index
    %c0_2 = arith.constant 0 : index
    %1 = vector.load %arg2[%c0_1, %c0_2] : memref<16x128xf32, #tpu.memory_space<vmem>>, vector<16x128xf32>
    %2 = math.absf %0 : vector<16x128xf32>
    %cst = arith.constant 0.000000e+00 : f32
    %3 = vector.broadcast %cst : f32 to vector<16x128xf32>
    %4 = arith.subf %3, %2 : vector<16x128xf32>
    %5 = math.exp %4 : vector<16x128xf32>
    %cst_3 = arith.constant 1.000000e+00 : f32
    %6 = vector.broadcast %cst_3 : f32 to vector<16x128xf32>
    %7 = arith.addf %6, %5 : vector<16x128xf32>
    %cst_4 = arith.constant 0.000000e+00 : f32
    %8 = vector.broadcast %cst_4 : f32 to vector<16x128xf32>
    %9 = arith.maximumf %0, %8 : vector<16x128xf32>
    %10 = arith.mulf %0, %1 : vector<16x128xf32>
    %11 = arith.subf %9, %10 : vector<16x128xf32>
    %12 = math.log %7 : vector<16x128xf32>
    %13 = arith.addf %11, %12 : vector<16x128xf32>
    %14 = tpu.reciprocal %7 {approx = true} : vector<16x128xf32> -> vector<16x128xf32>
    %15 = arith.mulf %7, %14 : vector<16x128xf32>
    %cst_5 = arith.constant 2.000000e+00 : f32
    %16 = vector.broadcast %cst_5 : f32 to vector<16x128xf32>
    %17 = arith.subf %16, %15 : vector<16x128xf32>
    %18 = arith.mulf %14, %17 : vector<16x128xf32>
    %cst_6 = arith.constant 0.000000e+00 : f32
    %19 = vector.broadcast %cst_6 : f32 to vector<16x128xf32>
    %20 = arith.cmpf oge, %0, %19 : vector<16x128xf32>
    %21 = arith.mulf %5, %18 : vector<16x128xf32>
    %22 = arith.select %20, %18, %21 : vector<16x128xi1>, vector<16x128xf32>
    %23 = arith.subf %22, %1 : vector<16x128xf32>
    %cst_7 = arith.constant 1.000000e+00 : f32
    %24 = vector.broadcast %cst_7 : f32 to vector<16x128xf32>
    %25 = arith.subf %23, %24 : vector<16x128xf32>
    %cst_8 = arith.constant 19.9600792 : f32
    %26 = vector.broadcast %cst_8 : f32 to vector<16x128xf32>
    %27 = arith.mulf %25, %26 : vector<16x128xf32>
    %28 = math.exp %27 : vector<16x128xf32>
    %cst_9 = arith.constant 1.000000e+00 : f32
    %29 = vector.broadcast %cst_9 : f32 to vector<16x128xf32>
    %30 = arith.subf %29, %28 : vector<16x128xf32>
    %31 = arith.mulf %13, %30 : vector<16x128xf32>
    %32 = vector.shape_cast %31 : vector<16x128xf32> to vector<2x8x128xf32>
    %cst_10 = arith.constant dense<0.000000e+00> : vector<8x128xf32>
    %33 = vector.multi_reduction <add>, %32, %cst_10 [0] : vector<2x8x128xf32> to vector<8x128xf32>
    %c0_11 = arith.constant 0 : index
    %c0_12 = arith.constant 0 : index
    %c0_13 = arith.constant 0 : index
    %34 = vector.load %arg3[%c0_11, %c0_12, %c0_13] : memref<1x8x128xf32, #tpu.memory_space<vmem>>, vector<1x8x128xf32>
    %35 = vector.shape_cast %34 : vector<1x8x128xf32> to vector<8x128xf32>
    %36 = vector.shape_cast %33 : vector<8x128xf32> to vector<1x8x128xf32>
    tpu.vector_store %arg3[%c0_11, %c0_12, %c0_13], %36 {strides = array<i32>} : memref<1x8x128xf32, #tpu.memory_space<vmem>>, vector<1x8x128xf32>,
    return
  }
  func.func @transform_0(%arg0: i32) -> (i32, i32) {
    %c0_i32 = arith.constant 0 : i32
    %c0_i32_0 = arith.constant 0 : i32
    return %arg0, %c0_i32 : i32, i32
  }
  func.func @transform_1(%arg0: i32) -> (i32, i32) {
    %c0_i32 = arith.constant 0 : i32
    %c0_i32_0 = arith.constant 0 : i32
    return %arg0, %c0_i32 : i32, i32
  }
  func.func @transform_2(%arg0: i32) -> (i32, i32, i32) {
    %c0_i32 = arith.constant 0 : i32
    %c0_i32_0 = arith.constant 0 : i32
    %c0_i32_1 = arith.constant 0 : i32
    return %arg0, %c0_i32, %c0_i32_0 : i32, i32, i32
  }
}

</mosaic_0001>

<bundles_post_ra>
// kernel: tpu_custom_call.1
= control target key start
LH: loop header
LB: loop body
LE: loop exit
PB: predicated region body
PF: predicated region fallthrough
CT: control target
= control target key end

     0   :  { %7 = vsyncpa [#allocation3], 0  ;;  %s263_s0 = inlined_call_operand.hbm [shape: f32[16,128], index: 0, kind: input, shape index: {}]   ;;  %s264_s1 = inlined_call_operand.hbm [shape: f32[16,128], index: 1, kind: input, shape index: {}]   ;;  %s265_s2 = inlined_call_operand.hbm [shape: f32[1,8,128], index: 2, kind: output, shape index: {}]  }
   0x1   :  { %8 = vsyncpa [#allocation6], 0 }
   0x2   :  { %9 = vsyncpa [#allocation4], 0  ;;  %s207_s9 = smov [#allocation2]   ;;  %s135_s13 = scalar_lea.hbm %s263_s0, 256 }
   0x3   :  { %s15_s10 = sshll.u32 %s207_s9, 4  ;;  %p136_p0 = scmp.ne.s32.totalorder %s263_s0, %s135_s13  ;;  %s16_s10 = int_to_ptr.vmem [resolvable:$true] %s15_s10 }
   0x4   :  { %p139_p1 = scmp.lt.u32.totalorder %s135_s13, %s263_s0 }
   0x6   :  { %p141_p2 = pnand %p139_p1, %p136_p0 }
   0x8   :  { %144 = shalt.err (!%p141_p2)
}
   0x9   :  { %s145_s18 = scalar_lea.vmem %s16_s10, 256  ;;  %p150_p4 = scmp.lt.s32.totalorder %s16_s10, %s16_s10 }
   0xa   :  { %p146_p3 = scmp.ne.s32.totalorder %s16_s10, %s145_s18  ;;  %p151_p5 = scmp.lt.s32.totalorder %s145_s18, %s145_s18 }
   0xc   :  { %p152_p6 = por %p151_p5, %p150_p4 }
   0xe   :  { %p153_p7 = pnand %p152_p6, %p146_p3 }
  0x10   :  { %156 = shalt.err (!%p153_p7)
}
  0x11   :  { %s208_s19 = smov 128   ;;  %s209_s20 = smov 8  }
  0x12   :  { %21 = dma.hbm_to_vmem [thread:$0]  %s263_s0, 256, %s16_s10, [#allocation3], %s208_s19, %s208_s19, %s209_s20  }
  0x13   :  { %s210_s23 = smov [#allocation5]   ;;  %s157_s27 = scalar_lea.hbm %s264_s1, 256 }
  0x14   :  { %s27_s24 = sshll.u32 %s210_s23, 4  ;;  %p158_p8 = scmp.ne.s32.totalorder %s264_s1, %s157_s27  ;;  %s28_s24 = int_to_ptr.vmem [resolvable:$true] %s27_s24 }
  0x15   :  { %p161_p9 = scmp.lt.u32.totalorder %s157_s27, %s264_s1 }
  0x17   :  { %p163_p10 = pnand %p161_p9, %p158_p8 }
  0x19   :  { %166 = shalt.err (!%p163_p10)
}
  0x1a   :  { %s167_s4 = scalar_lea.vmem %s28_s24, 256  ;;  %p172_p12 = scmp.lt.s32.totalorder %s28_s24, %s28_s24 }
  0x1b   :  { %p168_p11 = scmp.ne.s32.totalorder %s28_s24, %s167_s4  ;;  %p173_p13 = scmp.lt.s32.totalorder %s167_s4, %s167_s4 }
  0x1d   :  { %p174_p0 = por %p173_p13, %p172_p12 }
  0x1f   :  { %p175_p1 = pnand %p174_p0, %p168_p11 }
  0x21   :  { %178 = shalt.err (!%p175_p1)
}
  0x22   :  { %33 = dma.hbm_to_vmem [thread:$0]  %s264_s1, 256, %s28_s24, [#allocation6], %s208_s19, %s208_s19, %s209_s20  }
  0x23   :  { %201 = dma.done.wait [#allocation3], 256  }
  0x24   :  { %202 = vsyncadd [#allocation3], 4294967040 }
  0x25   :  { %203 = dma.done.wait [#allocation6], 256  }
  0x26   :  { %204 = vsyncadd [#allocation6], 4294967040  ;;  %v40_v0 = vld [vmem:[#allocation2] sm:$0xff]  ;;  %v41_v1 = vld [vmem:[#allocation2 + $0x8] sm:$0xff]  ;;  %s211_s1 = smov [#allocation7]  }
  0x27   :  { %v44_v2 = vand.u32 2147483647, %v40_v0  ;;  %v45_v3 = vand.u32 2147483647, %v41_v1  ;;  %vm74_vm0 = vcmp.ge.f32.partialorder %v40_v0, 0.0  ;;  %v42_v20 = vld [vmem:[#allocation5] sm:$0xff] }
  0x28   :  { %vm75_vm1 = vcmp.ge.f32.partialorder %v41_v1, 0.0  ;;  %v43_v22 = vld [vmem:[#allocation5 + $0x8] sm:$0xff]  ;;  %v54_v34 = vmax.f32 %v40_v0, 0.0  ;;  %v56_v35 = vmul.f32 %v42_v20, %v40_v0  ;;  %v55_v37 = vmax.f32 %v41_v1, 0.0  ;;  %s102_s6 = sshll.u32 %s211_s1, 4  ;;  %s103_s6 = int_to_ptr.vmem [resolvable:$true] %s102_s6 }
  0x29   :  { %v46_v4 = vsub.f32 0.0, %v44_v2  ;;  %v47_v5 = vsub.f32 0.0, %v45_v3  ;;  %v57_v38 = vmul.f32 %v43_v22, %v41_v1  ;;  %s179_s7 = scalar_lea.vmem %s103_s6, 128  ;;  %p184_p3 = scmp.lt.s32.totalorder %s103_s6, %s103_s6 }
  0x2a   :  { %v58_v40 = vsub.f32 %v54_v34, %v56_v35  ;;  %p180_p2 = scmp.ne.s32.totalorder %s103_s6, %s179_s7  ;;  %p185_p4 = scmp.lt.s32.totalorder %s179_s7, %s179_s7 }
  0x2b   :  { %v48_v6 = vmul.f32 1.442695, %v46_v4  ;;  %v50_v7 = vmul.f32 1.442695, %v47_v5  ;;  %v59_v42 = vsub.f32 %v55_v37, %v57_v38 }
  0x2c   :  { %p186_p5 = por %p185_p4, %p184_p3 }
  0x2d   :  { %119 = vpow2.f32 %v48_v6 }
  0x2e   :  { %121 = vpow2.f32 %v50_v7  ;;  %p187_p6 = pnand %p186_p5, %p180_p2 }
  0x37   :  { %v120_v8 = vpop.eup %119 }
  0x38   :  { %v122_v9 = vpop.eup %121  ;;  %v52_v10 = vadd.f32 1.0, %v120_v8 }
  0x39   :  { %v53_v11 = vadd.f32 1.0, %v122_v9 }
  0x3a   :  { %123 = vrcp.f32 %v52_v10 }
  0x3b   :  { %125 = vrcp.f32 %v53_v11 }
  0x3c   :  { %127 = vlog2.f32 %v52_v10 }
  0x3d   :  { %129 = vlog2.f32 %v53_v11 }
  0x44   :  { %v124_v12 = vpop.eup %123 }
  0x45   :  { %v126_v13 = vpop.eup %125  ;;  %v68_v14 = vmul.f32 %v124_v12, %v52_v10 }
  0x46   :  { %v69_v15 = vmul.f32 %v126_v13, %v53_v11  ;;  %v128_v36 = vpop.eup %127 }
  0x47   :  { %v70_v16 = vsub.f32 2.0, %v68_v14  ;;  %v130_v39 = vpop.eup %129  ;;  %v61_v41 = vmul.f32 0.6931472, %v128_v36 }
  0x48   :  { %v71_v17 = vsub.f32 2.0, %v69_v15  ;;  %v63_v43 = vmul.f32 0.6931472, %v130_v39 }
  0x49   :  { %v72_v18 = vmul.f32 %v124_v12, %v70_v16  ;;  %v64_v44 = vadd.f32 %v61_v41, %v58_v40 }
  0x4a   :  { %v73_v19 = vmul.f32 %v126_v13, %v71_v17  ;;  %v65_v46 = vadd.f32 %v63_v43, %v59_v42 }
  0x4b   :  { %v76_v21 = vmul.f32 %v120_v8, %v72_v18 }
  0x4c   :  { %v77_v23 = vmul.f32 %v122_v9, %v73_v19 }
  0x4d   :  { %v78_v24 = vsel %vm74_vm0, %v72_v18, %v76_v21 }
  0x4e   :  { %v79_v25 = vsel %vm75_vm1, %v73_v19, %v77_v23  ;;  %v80_v26 = vsub.f32 %v78_v24, %v42_v20 }
  0x4f   :  { %v81_v27 = vsub.f32 %v79_v25, %v43_v22 }
  0x50   :  { %v112_v28 = vadd.f32 -1.0, %v80_v26 }
  0x51   :  { %v113_v29 = vadd.f32 -1.0, %v81_v27 }
  0x52   :  { %v84_v30 = vmul.f32 19.96008, %v112_v28 }
  0x53   :  { %v85_v31 = vmul.f32 19.96008, %v113_v29 }
  0x54   :  { %v86_v32 = vmul.f32 1.442695, %v84_v30 }
  0x55   :  { %v88_v33 = vmul.f32 1.442695, %v85_v31 }
  0x56   :  { %131 = vpow2.f32 %v86_v32 }
  0x57   :  { %133 = vpow2.f32 %v88_v33 }
  0x60   :  { %v132_v45 = vpop.eup %131 }
  0x61   :  { %v134_v47 = vpop.eup %133  ;;  %v90_v48 = vsub.f32 1.0, %v132_v45 }
  0x62   :  { %v91_v49 = vsub.f32 1.0, %v134_v47 }
  0x63   :  { %v92_v50 = vmul.f32 %v90_v48, %v64_v44 }
  0x64   :  { %v93_v51 = vmul.f32 %v91_v49, %v65_v46 }
  0x66   :  { %v94_v52 = vadd.f32 %v93_v51, %v92_v50 }
  0x68   :  { %95 = vst [vmem:[#allocation7] sm:$0xff] %v94_v52 }
  0x69   :  { %190 = shalt.err (!%p187_p6)
}
  0x6a   :  { %s191_s10 = scalar_lea.hbm %s265_s2, 128 }
  0x6b   :  { %p192_p7 = scmp.ne.s32.totalorder %s265_s2, %s191_s10  ;;  %p195_p8 = scmp.lt.u32.totalorder %s191_s10, %s265_s2 }
  0x6d   :  { %p197_p9 = pnand %p195_p8, %p192_p7 }
  0x6f   :  { %200 = shalt.err (!%p197_p9)
}
  0x70   :  { %105 = dma.vmem_to_hbm [thread:$0]  %s103_s6, 128, %s265_s2, [#allocation4]  }
  0x71   :  { %205 = dma.done.wait [#allocation4], 128  }
  0x72   :  { %206 = vsyncadd [#allocation4], 4294967168 }
  0x73   :  { %109 = vsyncpa [#allocation3], 1 }
  0x74   :  { %110 = vsyncpa [#allocation6], 1 }
  0x75   :  { %111 = vsyncpa [#allocation4], 1 }

</bundles_post_ra>
